<compile_context>
chip_gen: v7x
topology: tpu7x:2x2x1
jax: 0.10.0
libtpu: 0.0.40
codegen_flags: <defaults>
</compile_context>

<pallas_src>
import functools

import jax
import jax.numpy as jnp
from jax import lax
from jax.experimental import pallas as pl
from jax.experimental.pallas import tpu as pltpu

BN_EPS = 1e-5
LANE = 128            # channel dims padded to multiples of the 128-lane vreg
SUB = 8               # f32 sublane tile
MAX_TILE = 256        # row / length tile upper bound (good on v5e/v6e/v7x)


# ---------------------------------------------------------------------------
# small host-side helpers (layout glue only)
# ---------------------------------------------------------------------------
def _round_up(v, m):
    return ((v + m - 1) // m) * m


def _pad_last(a, target):
    pad = target - a.shape[-1]
    if pad == 0:
        return a
    cfg = [(0, 0)] * a.ndim
    cfg[-1] = (0, pad)
    return jnp.pad(a, cfg)


def _pick_tile(dim, max_tile=MAX_TILE):
    return int(min(max_tile, _round_up(dim, SUB)))


# ---------------------------------------------------------------------------
# K1: ConvTranspose1d(k=2, s=2) as a single wide, row-tiled matmul.
#   out[n, 2t + p, o] = sum_c x[n, t, c] * W[c, o, p] + b[o]
# Columns [0:CoutP] of the kernel output are phase p=0, [CoutP:2*CoutP] p=1.
# ---------------------------------------------------------------------------
def _upconv_kernel(x_ref, w_ref, b_ref, y_ref):
    y_ref[...] = (jnp.dot(x_ref[...], w_ref[...],
                          preferred_element_type=jnp.float32) + b_ref[...])


def upconv_pallas(x2d, w_cat, b_cat):
    R, CinP = x2d.shape
    Cw = w_cat.shape[1]
    TR = _pick_tile(R)
    return pl.pallas_call(
        _upconv_kernel,
        grid=(pl.cdiv(R, TR),),
        in_specs=[pl.BlockSpec((TR, CinP), lambda i: (i, 0)),
                  pl.BlockSpec((CinP, Cw), lambda i: (0, 0)),
                  pl.BlockSpec((1, Cw), lambda i: (0, 0))],
        out_specs=pl.BlockSpec((TR, Cw), lambda i: (i, 0)),
        out_shape=jax.ShapeDtypeStruct((R, Cw), jnp.float32),
        compiler_params=pltpu.CompilerParams(dimension_semantics=("parallel",)),
    )(x2d, w_cat, b_cat)


# ---------------------------------------------------------------------------
# shared conv helpers (run inside the kernels)
# ---------------------------------------------------------------------------
def _shifted_rows(x, hp_last, hn_first, r, Lc):
    """Rows l-1 / l+1 for every row l of the tile (halo + boundary masking)."""
    TL = x.shape[0]
    x_prev = jnp.concatenate([hp_last, x[:TL - 1, :]], axis=0)
    x_prev = jnp.where(r >= 1, x_prev, 0.0)            # left 'padding=1' zero
    x_next = jnp.concatenate([x[1:, :], hn_first], axis=0)
    x_next = jnp.where(r + 1 < Lc, x_next, 0.0)        # right zero / tail mask
    return x_prev, x_next


def _conv3_acc(x, x_prev, x_next, w_ref):
    acc = jnp.dot(x_prev, w_ref[0], preferred_element_type=jnp.float32)
    acc += jnp.dot(x, w_ref[1], preferred_element_type=jnp.float32)
    acc += jnp.dot(x_next, w_ref[2], preferred_element_type=jnp.float32)
    return acc


def _write_stats(st_ref, acc, valid):
    """Per-tile per-channel sum (row 0) and sum-of-squares (row 1)."""
    accm = jnp.where(valid, acc, 0.0)                  # mask tail/garbage rows
    s = jnp.sum(accm, axis=0, keepdims=True)           # (1, C)
    q = jnp.sum(accm * accm, axis=0, keepdims=True)    # (1, C)
    row = lax.broadcasted_iota(jnp.int32, (SUB, acc.shape[1]), 0)
    st_ref[0, 0, :, :] = jnp.where(row == 0, s, jnp.where(row == 1, q, 0.0))


def _act_specs(C, TL, nH):
    """Main (1,TL,C) block plus clamped 8-row prev/next halo blocks."""
    k8 = TL // SUB
    main = pl.BlockSpec((1, TL, C), lambda n, t: (n, t, 0))
    prev = pl.BlockSpec((1, SUB, C),
                        lambda n, t: (n, jnp.maximum(t * k8 - 1, 0), 0))
    nxt = pl.BlockSpec((1, SUB, C),
                       lambda n, t: (n, jnp.minimum(t * k8 + k8, nH - 1), 0))
    return main, prev, nxt


# ---------------------------------------------------------------------------
# K2: conv1 over virtual concat([up, skip]) (split-K) + BN1 partial stats.
# ---------------------------------------------------------------------------
def _conv1_stats_kernel(up_ref, upp_ref, upn_ref, sk_ref, skp_ref, skn_ref,
                        wu_ref, ws_ref, y_ref, st_ref, *, TL, Lc):
    t = pl.program_id(1)
    r = t * TL + lax.broadcasted_iota(jnp.int32, (TL, 1), 0)   # global L index

    up = up_ref[0]
    sk = sk_ref[0]
    up_prev, up_next = _shifted_rows(up, upp_ref[0][SUB - 1:SUB, :],
                                     upn_ref[0][0:1, :], r, Lc)
    sk_prev, sk_next = _shifted_rows(sk, skp_ref[0][SUB - 1:SUB, :],
                                     skn_ref[0][0:1, :], r, Lc)

    acc = _conv3_acc(up, up_prev, up_next, wu_ref)
    acc += _conv3_acc(sk, sk_prev, sk_next, ws_ref)
    # conv bias omitted: cancels exactly inside the training-mode BatchNorm.

    y_ref[0] = acc
    _write_stats(st_ref, acc, r < Lc)


def conv1_stats_pallas(up, sk, wu, ws, TL):
    N, Lc, Cu = up.shape
    Cs = sk.shape[-1]
    Cout = wu.shape[-1]
    nLt = pl.cdiv(Lc, TL)
    nH = pl.cdiv(Lc, SUB)
    u_specs = _act_specs(Cu, TL, nH)
    s_specs = _act_specs(Cs, TL, nH)
    return pl.pallas_call(
        functools.partial(_conv1_stats_kernel, TL=TL, Lc=Lc),
        grid=(N, nLt),
        in_specs=[*u_specs, *s_specs,
                  pl.BlockSpec(wu.shape, lambda n, t: (0, 0, 0)),
                  pl.BlockSpec(ws.shape, lambda n, t: (0, 0, 0))],
        out_specs=(pl.BlockSpec((1, TL, Cout), lambda n, t: (n, t, 0)),
                   pl.BlockSpec((1, 1, SUB, Cout), lambda n, t: (n, t, 0, 0))),
        out_shape=(jax.ShapeDtypeStruct((N, Lc, Cout), jnp.float32),
                   jax.ShapeDtypeStruct((N, nLt, SUB, Cout), jnp.float32)),
        compiler_params=pltpu.CompilerParams(
            dimension_semantics=("parallel", "parallel")),
    )(up, up, up, sk, sk, sk, wu, ws)


# ---------------------------------------------------------------------------
# K3: BN1 affine + ReLU fused on load, conv2 + BN2 partial stats.
# ---------------------------------------------------------------------------
def _conv2_stats_kernel(x_ref, xp_ref, xn_ref, sc_ref, sh_ref, w_ref,
                        y_ref, st_ref, *, TL, Lc):
    t = pl.program_id(1)
    r = t * TL + lax.broadcasted_iota(jnp.int32, (TL, 1), 0)

    sc = sc_ref[...]
    sh = sh_ref[...]

    def bn_relu(v):                        # previous layer's BN affine + ReLU
        return jnp.maximum(v * sc + sh, 0.0)

    x = bn_relu(x_ref[0])
    hp = bn_relu(xp_ref[0][SUB - 1:SUB, :])
    hn = bn_relu(xn_ref[0][0:1, :])
    x_prev, x_next = _shifted_rows(x, hp, hn, r, Lc)

    acc = _conv3_acc(x, x_prev, x_next, w_ref)
    # conv bias omitted: cancels exactly inside the training-mode BatchNorm.

    y_ref[0] = acc
    _write_stats(st_ref, acc, r < Lc)


def conv2_stats_pallas(y1, sc, sh, w, TL):
    N, Lc, C = y1.shape
    Cout = w.shape[-1]
    nLt = pl.cdiv(Lc, TL)
    nH = pl.cdiv(Lc, SUB)
    a_specs = _act_specs(C, TL, nH)
    return pl.pallas_call(
        functools.partial(_conv2_stats_kernel, TL=TL, Lc=Lc),
        grid=(N, nLt),
        in_specs=[*a_specs,
                  pl.BlockSpec((1, C), lambda n, t: (0, 0)),
                  pl.BlockSpec((1, C), lambda n, t: (0, 0)),
                  pl.BlockSpec(w.shape, lambda n, t: (0, 0, 0))],
        out_specs=(pl.BlockSpec((1, TL, Cout), lambda n, t: (n, t, 0)),
                   pl.BlockSpec((1, 1, SUB, Cout), lambda n, t: (n, t, 0, 0))),
        out_shape=(jax.ShapeDtypeStruct((N, Lc, Cout), jnp.float32),
                   jax.ShapeDtypeStruct((N, nLt, SUB, Cout), jnp.float32)),
        compiler_params=pltpu.CompilerParams(
            dimension_semantics=("parallel", "parallel")),
    )(y1, y1, y1, sc, sh, w)


# ---------------------------------------------------------------------------
# K4: final BN affine + ReLU (row-tiled elementwise).
# ---------------------------------------------------------------------------
def _affine_relu_kernel(x_ref, sc_ref, sh_ref, o_ref):
    o_ref[...] = jnp.maximum(x_ref[...] * sc_ref[...] + sh_ref[...], 0.0)


def affine_relu_pallas(x2d, sc, sh):
    R, C = x2d.shape
    TR = _pick_tile(R)
    return pl.pallas_call(
        _affine_relu_kernel,
        grid=(pl.cdiv(R, TR),),
        in_specs=[pl.BlockSpec((TR, C), lambda i: (i, 0)),
                  pl.BlockSpec((1, C), lambda i: (0, 0)),
                  pl.BlockSpec((1, C), lambda i: (0, 0))],
        out_specs=pl.BlockSpec((TR, C), lambda i: (i, 0)),
        out_shape=jax.ShapeDtypeStruct((R, C), jnp.float32),
        compiler_params=pltpu.CompilerParams(dimension_semantics=("parallel",)),
    )(x2d, sc, sh)


# ---------------------------------------------------------------------------
# BN(train) finalize: tiny (C,)-sized math on the partial stats (f32).
# ---------------------------------------------------------------------------
def _bn_affine(stats, gamma_p, beta_p, count):
    tot = jnp.sum(stats, axis=(0, 1))          # (8, C); row0 = sum, row1 = sumsq
    mean = tot[0] / count
    var = jnp.maximum(tot[1] / count - mean * mean, 0.0)
    inv = lax.rsqrt(var + BN_EPS)
    scale = gamma_p * inv
    shift = beta_p - mean * scale
    return scale.reshape(1, -1), shift.reshape(1, -1)


# ---------------------------------------------------------------------------
# Parameters (deterministic; shapes match the PyTorch module __init__).
# ---------------------------------------------------------------------------
def init_params(key, in_channels, out_channels):
    ks = jax.random.split(key, 10)

    def rn(k, shape, s=0.1):
        return jax.random.normal(k, shape, jnp.float32) * s

    return dict(
        # ConvTranspose1d(in, out, k=2, s=2): weight (in, out, 2), bias (out,)
        w_up=rn(ks[0], (in_channels, out_channels, 2)),
        b_up=rn(ks[1], (out_channels,)),
        # DoubleConv conv1: Conv1d(in_channels, out_channels, 3)
        w1=rn(ks[2], (out_channels, in_channels, 3)),
        b1=rn(ks[3], (out_channels,)),
        g1=1.0 + rn(ks[4], (out_channels,)),
        be1=rn(ks[5], (out_channels,)),
        # DoubleConv conv2: Conv1d(out_channels, out_channels, 3)
        w2=rn(ks[6], (out_channels, out_channels, 3)),
        b2=rn(ks[7], (out_channels,)),
        g2=1.0 + rn(ks[8], (out_channels,)),
        be2=rn(ks[9], (out_channels,)),
    )


# ---------------------------------------------------------------------------
# DecoderBlock.forward (NCL in / NCL out, like the PyTorch module).
# ---------------------------------------------------------------------------
def decoder_block_forward(p, x_ncl, skip_ncl, output_size=None):
    N, Cin, L = x_ncl.shape
    Cout = p["w_up"].shape[1]
    Cskip = skip_ncl.shape[1]

    CinP = _round_up(Cin, LANE)
    CoutP = _round_up(Cout, LANE)
    CskP = _round_up(Cskip, LANE)

    # NCL -> NLC + lane padding of the channel axis (no-op once channels are
    # already 128-multiples, as at production sizes).
    x = _pad_last(jnp.transpose(x_ncl, (0, 2, 1)), CinP)        # (N, L, CinP)
    skip = _pad_last(jnp.transpose(skip_ncl, (0, 2, 1)), CskP)  # (N, Ls, CskP)

    # ---- K1: upconv as one (CinP x 2*CoutP) matmul; interleave = free reshape.
    w_cat = jnp.zeros((CinP, 2 * CoutP), jnp.float32)
    w_cat = w_cat.at[:Cin, :Cout].set(p["w_up"][:, :, 0])
    w_cat = w_cat.at[:Cin, CoutP:CoutP + Cout].set(p["w_up"][:, :, 1])
    b_cat = jnp.zeros((1, 2 * CoutP), jnp.float32)
    b_cat = b_cat.at[0, :Cout].set(p["b_up"])
    b_cat = b_cat.at[0, CoutP:CoutP + Cout].set(p["b_up"])

    up2d = upconv_pallas(x.reshape(N * L, CinP), w_cat, b_cat)   # (N*L, 2*CoutP)
    up = up2d.reshape(N, L, 2, CoutP).reshape(N, 2 * L, CoutP)   # metadata only

    if output_size is not None:
        # TODO(synk): F.interpolate(mode='linear', align_corners=False) branch
        # is not implemented; the module default (output_size=None) is covered.
        raise NotImplementedError("output_size interpolation not implemented")

    # ---- center-crop mismatch handling (static shapes, mirrors the torch code)
    diff = skip.shape[1] - up.shape[1]
    if diff > 0:
        skip = skip[:, diff // 2: skip.shape[1] - (diff - diff // 2), :]
    elif diff < 0:
        start = -diff // 2
        up = up[:, start: up.shape[1] + (diff - diff // 2), :]
    Lc = up.shape[1]
    TL = _pick_tile(Lc)
    count = float(N * Lc)

    # ---- K2: conv1 (concat fused as split-K over [up | skip]) + BN1 stats.
    w1 = jnp.transpose(p["w1"], (2, 1, 0))                 # (3, Cin_tot, Cout)
    wu = jnp.zeros((3, CoutP, CoutP), jnp.float32).at[:, :Cout, :Cout].set(
        w1[:, :Cout, :])
    ws = jnp.zeros((3, CskP, CoutP), jnp.float32).at[:, :Cskip, :Cout].set(
        w1[:, Cout:, :])
    y1, st1 = conv1_stats_pallas(up, skip, wu, ws, TL)
    sc1, sh1 = _bn_affine(st1, _pad_last(p["g1"], CoutP),
                          _pad_last(p["be1"], CoutP), count)

    # ---- K3: BN1 affine + ReLU fused into conv2's input path, + BN2 stats.
    w2 = jnp.transpose(p["w2"], (2, 1, 0))                 # (3, Cout, Cout)
    w2p = jnp.zeros((3, CoutP, CoutP), jnp.float32).at[:, :Cout, :Cout].set(w2)
    y2, st2 = conv2_stats_pallas(y1, sc1, sh1, w2p, TL)
    sc2, sh2 = _bn_affine(st2, _pad_last(p["g2"], CoutP),
                          _pad_last(p["be2"], CoutP), count)

    # ---- K4: final BN2 affine + ReLU.
    out2d = affine_relu_pallas(y2.reshape(N * Lc, CoutP), sc2, sh2)
    out = out2d.reshape(N, Lc, CoutP)[:, :, :Cout]
    return jnp.transpose(out, (0, 2, 1))                   # back to NCL


# ---------------------------------------------------------------------------
# Pure-JAX reference (same math, incl. conv biases, no Pallas).
# ---------------------------------------------------------------------------
def _conv_bn_relu_ref(h, w, b, g, be):
    Lh = h.shape[1]
    hp = jnp.pad(h, ((0, 0), (1, 1), (0, 0)))
    wk = jnp.transpose(w, (2, 1, 0))
    acc = sum(jnp.einsum("nlc,co->nlo", hp[:, k:k + Lh, :], wk[k]) for k in range(3))
    acc = acc + b.reshape(1, 1, -1)
    mean = jnp.mean(acc, axis=(0, 1), keepdims=True)
    var = jnp.mean((acc - mean) ** 2, axis=(0, 1), keepdims=True)
    out = (acc - mean) * lax.rsqrt(var + BN_EPS) * g.reshape(1, 1, -1) + be.reshape(1, 1, -1)
    return jnp.maximum(out, 0.0)


def ref_forward(p, x_ncl, skip_ncl):
    x = jnp.transpose(x_ncl, (0, 2, 1))
    skip = jnp.transpose(skip_ncl, (0, 2, 1))
    N, L, _ = x.shape
    Cout = p["w_up"].shape[1]
    y0 = x @ p["w_up"][:, :, 0] + p["b_up"]
    y1 = x @ p["w_up"][:, :, 1] + p["b_up"]
    up = jnp.stack([y0, y1], axis=2).reshape(N, 2 * L, Cout)
    cat = jnp.concatenate([up, skip], axis=-1)          # diff == 0 for test shapes
    h1 = _conv_bn_relu_ref(cat, p["w1"], p["b1"], p["g1"], p["be1"])
    h2 = _conv_bn_relu_ref(h1, p["w2"], p["b2"], p["g2"], p["be2"])
    return jnp.transpose(h2, (0, 2, 1))


if __name__ == "__main__":
    key = jax.random.PRNGKey(0)
    kx, ksk, kp = jax.random.split(key, 3)

    N, IN_CH, OUT_CH, L = 2, 8, 4, 16
    x = jax.random.normal(kx, (N, IN_CH, L), jnp.float32)             # NCL
    skip = jax.random.normal(ksk, (N, OUT_CH, 2 * L), jnp.float32)    # NCL
    params = init_params(kp, IN_CH, OUT_CH)

    out = jax.block_until_ready(decoder_block_forward(params, x, skip))
    ref = jax.block_until_ready(ref_forward(params, x, skip))

    assert out.shape == (N, OUT_CH, 2 * L), out.shape
    err = float(jnp.max(jnp.abs(out - ref)))
    assert err < 1e-2, f"mismatch vs reference: max|diff|={err}"
    print("KERNEL_OK")
</pallas_src>

<mosaic_0001>
module attributes {stable_mosaic.version = 11 : i64} {
  func.func @_upconv_kernel(%arg0: i32, %arg1: memref<32x128xf32, #tpu.memory_space<vmem>>, %arg2: memref<128x256xf32, #tpu.memory_space<vmem>>, %arg3: memref<1x256xf32, #tpu.memory_space<vmem>>, %arg4: memref<32x256xf32, #tpu.memory_space<vmem>>) attributes {dimension_semantics = [#tpu.dimension_semantics<parallel>], iteration_bounds = array<i64: 1>, scalar_prefetch = 0 : i64, scratch_operands = 0 : i64, tpu.core_type = #tpu.core_type<tc>, window_params = [{transform_indices = @transform_0, window_bounds = array<i64: 32, 128>}, {pipeline_mode = #tpu.pipeline_mode<synchronous>, transform_indices = @transform_1, window_bounds = array<i64: 128, 256>}, {pipeline_mode = #tpu.pipeline_mode<synchronous>, transform_indices = @transform_2, window_bounds = array<i64: 1, 256>}, {transform_indices = @transform_3, window_bounds = array<i64: 32, 256>}]} {
    %c0 = arith.constant 0 : index
    %c0_0 = arith.constant 0 : index
    %0 = vector.load %arg1[%c0, %c0_0] : memref<32x128xf32, #tpu.memory_space<vmem>>, vector<32x128xf32>
    %c0_1 = arith.constant 0 : index
    %c0_2 = arith.constant 0 : index
    %1 = vector.load %arg2[%c0_1, %c0_2] : memref<128x256xf32, #tpu.memory_space<vmem>>, vector<128x256xf32>
    %cst = arith.constant dense<0.000000e+00> : vector<32x256xf32>
    %2 = tpu.matmul %0, %1, %cst {dimension_numbers = #tpu.dot_dimension_numbers<[1], [0], [0], [1], [0, 0, 1, 1], [], []>} : vector<32x128xf32>, vector<128x256xf32>, vector<32x256xf32> -> vector<32x256xf32>
    %c0_3 = arith.constant 0 : index
    %c0_4 = arith.constant 0 : index
    %3 = vector.load %arg3[%c0_3, %c0_4] : memref<1x256xf32, #tpu.memory_space<vmem>>, vector<1x256xf32>
    %4 = vector.broadcast %3 : vector<1x256xf32> to vector<32x256xf32>
    %5 = arith.addf %2, %4 : vector<32x256xf32>
    %c0_5 = arith.constant 0 : index
    %c0_6 = arith.constant 0 : index
    %6 = vector.load %arg4[%c0_5, %c0_6] : memref<32x256xf32, #tpu.memory_space<vmem>>, vector<32x256xf32>
    tpu.vector_store %arg4[%c0_5, %c0_6], %5 {strides = array<i32>} : memref<32x256xf32, #tpu.memory_space<vmem>>, vector<32x256xf32>,
    return
  }
  func.func @transform_0(%arg0: i32) -> (i32, i32) {
    %c0_i32 = arith.constant 0 : i32
    %c0_i32_0 = arith.constant 0 : i32
    return %arg0, %c0_i32 : i32, i32
  }
  func.func @transform_1(%arg0: i32) -> (i32, i32) {
    %c0_i32 = arith.constant 0 : i32
    %c0_i32_0 = arith.constant 0 : i32
    %c0_i32_1 = arith.constant 0 : i32
    return %c0_i32, %c0_i32_0 : i32, i32
  }
  func.func @transform_2(%arg0: i32) -> (i32, i32) {
    %c0_i32 = arith.constant 0 : i32
    %c0_i32_0 = arith.constant 0 : i32
    %c0_i32_1 = arith.constant 0 : i32
    return %c0_i32, %c0_i32_0 : i32, i32
  }
  func.func @transform_3(%arg0: i32) -> (i32, i32) {
    %c0_i32 = arith.constant 0 : i32
    %c0_i32_0 = arith.constant 0 : i32
    return %arg0, %c0_i32 : i32, i32
  }
}

</mosaic_0001>

<bundles_post_ra>
// kernel: tpu_custom_call.1
= control target key start
LH: loop header
LB: loop body
LE: loop exit
PB: predicated region body
PF: predicated region fallthrough
CT: control target
= control target key end

     0   :  { %8 = vsyncpa [#allocation3], 0  ;;  %s411_s0 = inlined_call_operand.hbm [shape: f32[32,128], index: 0, kind: input, shape index: {}]   ;;  %s412_s1 = inlined_call_operand.hbm [shape: f32[128,256], index: 1, kind: input, shape index: {}]   ;;  %s413_s2 = inlined_call_operand.vmem [shape: f32[1,256], index: 2, kind: input, shape index: {}]   ;;  %s414_s3 = inlined_call_operand.hbm [shape: f32[32,256], index: 3, kind: output, shape index: {}]  }
   0x1   :  { %9 = vsyncpa [#allocation6], 0 }
   0x2   :  { %10 = vsyncpa [#allocation4], 0  ;;  %s334_s12 = smov [#allocation2]   ;;  %s262_s16 = scalar_lea.hbm %s411_s0, 512 }
   0x3   :  { %s16_s13 = sshll.u32 %s334_s12, 4  ;;  %p263_p0 = scmp.ne.s32.totalorder %s411_s0, %s262_s16  ;;  %s17_s13 = int_to_ptr.vmem [resolvable:$true] %s16_s13 }
   0x4   :  { %p266_p1 = scmp.lt.u32.totalorder %s262_s16, %s411_s0 }
   0x6   :  { %p268_p2 = pnand %p266_p1, %p263_p0 }
   0x8   :  { %271 = shalt.err (!%p268_p2)
}
   0x9   :  { %s272_s21 = scalar_lea.vmem %s17_s13, 512  ;;  %p277_p4 = scmp.lt.s32.totalorder %s17_s13, %s17_s13 }
   0xa   :  { %p273_p3 = scmp.ne.s32.totalorder %s17_s13, %s272_s21  ;;  %p278_p5 = scmp.lt.s32.totalorder %s272_s21, %s272_s21 }
   0xc   :  { %p279_p6 = por %p278_p5, %p277_p4 }
   0xe   :  { %p280_p7 = pnand %p279_p6, %p273_p3 }
  0x10   :  { %283 = shalt.err (!%p280_p7)
}
  0x11   :  { %s335_s22 = smov 128   ;;  %s336_s23 = smov 8  }
  0x12   :  { %22 = dma.hbm_to_vmem [thread:$0]  %s411_s0, 512, %s17_s13, [#allocation3], %s335_s22, %s335_s22, %s336_s23  }
  0x13   :  { %s337_s26 = smov [#allocation5]   ;;  %s284_s30 = scalar_lea.hbm %s412_s1, 4096 }
  0x14   :  { %s28_s27 = sshll.u32 %s337_s26, 4  ;;  %p285_p8 = scmp.ne.s32.totalorder %s412_s1, %s284_s30  ;;  %s29_s27 = int_to_ptr.vmem [resolvable:$true] %s28_s27 }
  0x15   :  { %p288_p9 = scmp.lt.u32.totalorder %s284_s30, %s412_s1 }
  0x17   :  { %p290_p10 = pnand %p288_p9, %p285_p8 }
  0x19   :  { %293 = shalt.err (!%p290_p10)
}
  0x1a   :  { %s294_s8 = scalar_lea.vmem %s29_s27, 4096  ;;  %p299_p12 = scmp.lt.s32.totalorder %s29_s27, %s29_s27 }
  0x1b   :  { %p295_p11 = scmp.ne.s32.totalorder %s29_s27, %s294_s8  ;;  %p300_p13 = scmp.lt.s32.totalorder %s294_s8, %s294_s8 }
  0x1d   :  { %p301_p0 = por %p300_p13, %p299_p12 }
  0x1f   :  { %p302_p1 = pnand %p301_p0, %p295_p11 }
  0x21   :  { %305 = shalt.err (!%p302_p1)
}
  0x22   :  { %s338_s0 = smov 256   ;;  %s339_s9 = smov 16  }
  0x23   :  { %34 = dma.hbm_to_vmem [thread:$0]  %s412_s1, 4096, %s29_s27, [#allocation6], %s338_s0, %s338_s0, %s339_s9  }
  0x24   :  { %328 = dma.done.wait [#allocation3], 512  }
  0x25   :  { %329 = vsyncadd [#allocation3], 4294966784 }
  0x26   :  { %330 = dma.done.wait [#allocation6], 4096  }
  0x27   :  { %331 = vsyncadd [#allocation6], 4294963200  ;;  %v340_v0 = vmov 0.0   ;;  %v48_v1 = vld [vmem:[#allocation5 + $0x8] sm:$0xff]  ;;  %v50_v2 = vld [vmem:[#allocation5 + $0x18] sm:$0xff]  ;;  %v81_v53 = vlaneseq  ;;  %s341_s13 = smov [#allocation7]  }
  0x28   :  { %155 = vmatprep.mubr.f32.mxu0 %v340_v0  ;;  %167 = vmatprep.mubr.f32.mxu1 %v340_v0  ;;  %v47_v3 = vld [vmem:[#allocation5] sm:$0xff]  ;;  %v206_v4 = vpack.c.bf16 %v50_v2, %v48_v1  ;;  %v49_v5 = vld [vmem:[#allocation5 + $0x10] sm:$0xff]  ;;  %v52_v6 = vld [vmem:[#allocation5 + $0x28] sm:$0xff]  ;;  %s193_s14 = sshll.u32 %s341_s13, 4  ;;  %s194_s14 = int_to_ptr.vmem [resolvable:$true] %s193_s14 }
  0x29   :  { %v54_v7 = vld [vmem:[#allocation5 + $0x38] sm:$0xff]  ;;  %v208_v8 = vpack.c.bf16 %v49_v5, %v47_v3  ;;  %v51_v10 = vld [vmem:[#allocation5 + $0x20] sm:$0xff]  ;;  %v53_v11 = vld [vmem:[#allocation5 + $0x30] sm:$0xff]  ;;  %v82_v54 = vshrl.u32 %v81_v53, 7  ;;  %p311_p3 = scmp.lt.s32.totalorder %s194_s14, %s194_s14 }
  0x2a   :  { %v210_v9 = vpack.c.bf16 %v54_v7, %v52_v6  ;;  %v56_v12 = vld [vmem:[#allocation5 + $0x48] sm:$0xff]  ;;  %207 = vmatprep.subr.bf16.mxu0 %v206_v4  ;;  %238 = vmatprep.subr.bf16.mxu1 %v206_v4  ;;  %v58_v13 = vld [vmem:[#allocation5 + $0x58] sm:$0xff]  ;;  %v212_v14 = vpack.c.bf16 %v53_v11, %v51_v10  ;;  %v55_v16 = vld [vmem:[#allocation5 + $0x40] sm:$0xff] }
  0x2b   :  { %209 = vmatpush1.bf16.msra.mxu0 %v208_v8  ;;  %246 = vmatpush1.bf16.msra.mxu1 %v208_v8  ;;  %v214_v15 = vpack.c.bf16 %v58_v13, %v56_v12  ;;  %v57_v17 = vld [vmem:[#allocation5 + $0x50] sm:$0xff]  ;;  %v60_v18 = vld [vmem:[#allocation5 + $0x68] sm:$0xff]  ;;  %v62_v19 = vld [vmem:[#allocation5 + $0x78] sm:$0xff]  ;;  %v83_v55 = vsub.s32 0, %v82_v54  ;;  %v87_v57 = vsub.s32 1, %v82_v54 }
  0x2c   :  { %211 = vmatprep.subr.bf16.mxu0 %v210_v9  ;;  %239 = vmatprep.subr.bf16.mxu1 %v210_v9  ;;  %v216_v20 = vpack.c.bf16 %v57_v17, %v55_v16  ;;  %v218_v21 = vpack.c.bf16 %v62_v19, %v60_v18  ;;  %v59_v22 = vld [vmem:[#allocation5 + $0x60] sm:$0xff]  ;;  %v61_v23 = vld [vmem:[#allocation5 + $0x70] sm:$0xff]  ;;  %v64_v24 = vld [vmem:[#allocation5 + $0x88] sm:$0xff] }
  0x2d   :  { %v66_v25 = vld [vmem:[#allocation5 + $0x98] sm:$0xff]  ;;  %v220_v26 = vpack.c.bf16 %v61_v23, %v59_v22  ;;  %v63_v28 = vld [vmem:[#allocation5 + $0x80] sm:$0xff]  ;;  %v65_v29 = vld [vmem:[#allocation5 + $0x90] sm:$0xff] }
  0x2e   :  { %v222_v27 = vpack.c.bf16 %v66_v25, %v64_v24  ;;  %v68_v30 = vld [vmem:[#allocation5 + $0xa8] sm:$0xff]  ;;  %v70_v31 = vld [vmem:[#allocation5 + $0xb8] sm:$0xff]  ;;  %v224_v32 = vpack.c.bf16 %v65_v29, %v63_v28  ;;  %v67_v34 = vld [vmem:[#allocation5 + $0xa0] sm:$0xff] }
  0x2f   :  { %213 = vmatpush1.bf16.msra.mxu0 %v212_v14  ;;  %247 = vmatpush1.bf16.msra.mxu1 %v212_v14  ;;  %v226_v33 = vpack.c.bf16 %v70_v31, %v68_v30  ;;  %v69_v35 = vld [vmem:[#allocation5 + $0xb0] sm:$0xff]  ;;  %v72_v36 = vld [vmem:[#allocation5 + $0xc8] sm:$0xff]  ;;  %v74_v37 = vld [vmem:[#allocation5 + $0xd8] sm:$0xff] }
  0x30   :  { %215 = vmatprep.subr.bf16.mxu0 %v214_v15  ;;  %240 = vmatprep.subr.bf16.mxu1 %v214_v15  ;;  %v228_v38 = vpack.c.bf16 %v69_v35, %v67_v34  ;;  %v230_v39 = vpack.c.bf16 %v74_v37, %v72_v36  ;;  %v71_v40 = vld [vmem:[#allocation5 + $0xc0] sm:$0xff]  ;;  %v73_v41 = vld [vmem:[#allocation5 + $0xd0] sm:$0xff]  ;;  %v76_v42 = vld [vmem:[#allocation5 + $0xe8] sm:$0xff] }
  0x31   :  { %v78_v43 = vld [vmem:[#allocation5 + $0xf8] sm:$0xff]  ;;  %v232_v44 = vpack.c.bf16 %v73_v41, %v71_v40  ;;  %v75_v46 = vld [vmem:[#allocation5 + $0xe0] sm:$0xff]  ;;  %v77_v47 = vld [vmem:[#allocation5 + $0xf0] sm:$0xff] }
  0x32   :  { %v234_v45 = vpack.c.bf16 %v78_v43, %v76_v42  ;;  %v236_v48 = vpack.c.bf16 %v77_v47, %v75_v46  ;;  %v43_v49 = vld [vmem:[#allocation2] sm:$0xff]  ;;  %v45_v50 = vld [vmem:[#allocation2 + $0x10] sm:$0xff]  ;;  %v44_v51 = vld [vmem:[#allocation2 + $0x8] sm:$0xff] }
  0x33   :  { %217 = vmatpush1.bf16.msra.mxu0 %v216_v20  ;;  %248 = vmatpush1.bf16.msra.mxu1 %v216_v20  ;;  %v46_v52 = vld [vmem:[#allocation2 + $0x18] sm:$0xff]  ;;  %v79_v56 = vld [vmem:[%s413_s2] sm:$0x3]  ;;  %s306_s2 = scalar_lea.vmem %s194_s14, 1024 }
  0x34   :  { %219 = vmatprep.subr.bf16.mxu0 %v218_v21  ;;  %241 = vmatprep.subr.bf16.mxu1 %v218_v21  ;;  %v84_v58 = vrot.slane %v79_v56, %v83_v55  ;;  %v88_v59 = vrot.slane %v79_v56, %v87_v57  ;;  %p307_p2 = scmp.ne.s32.totalorder %s194_s14, %s306_s2  ;;  %p312_p4 = scmp.lt.s32.totalorder %s306_s2, %s306_s2 }
  0x36   :  { %p313_p5 = por %p312_p4, %p311_p3 }
  0x37   :  { %221 = vmatpush1.bf16.msra.mxu0 %v220_v26  ;;  %249 = vmatpush1.bf16.msra.mxu1 %v220_v26 }
  0x38   :  { %223 = vmatprep.subr.bf16.mxu0 %v222_v27  ;;  %242 = vmatprep.subr.bf16.mxu1 %v222_v27  ;;  %p314_p6 = pnand %p313_p5, %p307_p2 }
  0x3b   :  { %225 = vmatpush1.bf16.msra.mxu0 %v224_v32  ;;  %250 = vmatpush1.bf16.msra.mxu1 %v224_v32 }
  0x3c   :  { %227 = vmatprep.subr.bf16.mxu0 %v226_v33  ;;  %243 = vmatprep.subr.bf16.mxu1 %v226_v33 }
  0x3f   :  { %229 = vmatpush1.bf16.msra.mxu0 %v228_v38  ;;  %251 = vmatpush1.bf16.msra.mxu1 %v228_v38 }
  0x40   :  { %231 = vmatprep.subr.bf16.mxu0 %v230_v39  ;;  %244 = vmatprep.subr.bf16.mxu1 %v230_v39 }
  0x43   :  { %233 = vmatpush1.bf16.msra.mxu0 %v232_v44  ;;  %252 = vmatpush1.bf16.msra.mxu1 %v232_v44 }
  0x44   :  { %235 = vmatprep.subr.bf16.mxu0 %v234_v45  ;;  %245 = vmatprep.subr.bf16.mxu1 %v234_v45 }
  0x47   :  { %237 = vmatpush1.bf16.msra.mxu0 %v236_v48  ;;  %253 = vmatpush1.bf16.msra.mxu1 %v236_v48 }
  0x4a   :  { %156 = vmatmul.mubr.f32.vlgmr.msra.gmra.mrb[0].mxu0 %v43_v49  ;;  %168 = vmatmul.mubr.f32.vlgmr.msra.gmra.mrb[0].mxu1 %v45_v50 }
  0x4b   :  { %161 = vmatprep.mubr.f32.mxu0 %v340_v0  ;;  %173 = vmatprep.mubr.f32.mxu1 %v340_v0 }
  0x4e   :  { %162 = vmatmul.mubr.f32.gmra.mrb[2].mxu0 %v44_v51  ;;  %174 = vmatmul.mubr.f32.gmra.mrb[2].mxu1 %v46_v52 }
 0x11d   :  { %v157_v60 = vpop.f32.mrb[0].mxu0  ;;  %v169_v61 = vpop.f32.mrb[0].mxu1 }
 0x11e   :  { %v158_v62 = vadd.f32 %v157_v60, %v84_v58  ;;  %v170_v63 = vadd.f32 %v169_v61, %v84_v58  ;;  %v159_v1 = vpop.f32.mrb[1].mxu0  ;;  %v171_v0 = vpop.f32.mrb[1].mxu1 }
 0x11f   :  { %v160_v2 = vadd.f32 %v159_v1, %v88_v59  ;;  %v172_v3 = vadd.f32 %v171_v0, %v88_v59 }
 0x120   :  { %180 = vst [vmem:[#allocation7] sm:$0xff] %v158_v62  ;;  %184 = vst [vmem:[#allocation7 + $0x20] sm:$0xff] %v170_v63 }
 0x121   :  { %181 = vst [vmem:[#allocation7 + $0x8] sm:$0xff] %v160_v2  ;;  %185 = vst [vmem:[#allocation7 + $0x28] sm:$0xff] %v172_v3  ;;  %v163_v4 = vpop.f32.mrb[2].mxu0  ;;  %v175_v5 = vpop.f32.mrb[2].mxu1 }
 0x122   :  { %v164_v6 = vadd.f32 %v163_v4, %v84_v58  ;;  %v176_v7 = vadd.f32 %v175_v5, %v84_v58  ;;  %v165_v8 = vpop.f32.mrb[3].mxu0  ;;  %v177_v9 = vpop.f32.mrb[3].mxu1 }
 0x123   :  { %v166_v10 = vadd.f32 %v165_v8, %v88_v59  ;;  %v178_v11 = vadd.f32 %v177_v9, %v88_v59 }
 0x124   :  { %182 = vst [vmem:[#allocation7 + $0x10] sm:$0xff] %v164_v6  ;;  %186 = vst [vmem:[#allocation7 + $0x30] sm:$0xff] %v176_v7 }
 0x125   :  { %183 = vst [vmem:[#allocation7 + $0x18] sm:$0xff] %v166_v10  ;;  %187 = vst [vmem:[#allocation7 + $0x38] sm:$0xff] %v178_v11 }
 0x126   :  { %317 = shalt.err (!%p314_p6)
}
 0x127   :  { %s318_s17 = scalar_lea.hbm %s414_s3, 1024 }
 0x128   :  { %p319_p7 = scmp.ne.s32.totalorder %s414_s3, %s318_s17  ;;  %p322_p8 = scmp.lt.u32.totalorder %s318_s17, %s414_s3 }
 0x12a   :  { %p324_p9 = pnand %p322_p8, %p319_p7 }
 0x12c   :  { %327 = shalt.err (!%p324_p9)
}
 0x12d   :  { %199 = dma.vmem_to_hbm [thread:$0]  %s194_s14, 1024, %s414_s3, [#allocation4], %s338_s0, %s338_s0, %s339_s9  }
 0x12e   :  { %332 = dma.done.wait [#allocation4], 1024  }
 0x12f   :  { %333 = vsyncadd [#allocation4], 4294966272 }
 0x130   :  { %203 = vsyncpa [#allocation3], 1 }
 0x131   :  { %204 = vsyncpa [#allocation6], 1 }
 0x132   :  { %205 = vsyncpa [#allocation4], 1 }

</bundles_post_ra>
